<compile_context>
chip_gen: v7x
topology: tpu7x:2x2x1
jax: 0.10.0
libtpu: 0.0.40
codegen_flags: <defaults>
</compile_context>

<pallas_src>
import jax
import jax.numpy as jnp
from jax import lax
from jax.experimental import pallas as pl
from jax.experimental.pallas import tpu as pltpu


def _round_up(v, m):
    return (v + m - 1) // m * m


def _make_kernel(n_rows, tile_n, need_mask):
    def kernel(x_ref, y_ref, out_ref):
        x = x_ref[...].astype(jnp.float32)          # (tile_n, C)
        y = y_ref[...].astype(jnp.float32)          # (tile_n, C) target probabilities

        # Row-wise max-subtracted log-sum-exp (class axis == lanes).
        m = jnp.max(x, axis=-1, keepdims=True)
        lse = jnp.log(jnp.sum(jnp.exp(x - m), axis=-1, keepdims=True)) + m  # (tile_n, 1)

        # KLDiv(log_softmax(x), y) pointwise = xlogy(y, y) - y * (x - lse).
        # Fold the per-row lse term so the multiply is per row, not per element.
        xlogy = jnp.where(y > 0, y * jnp.log(jnp.where(y > 0, y, 1.0)), 0.0)
        row_sum = (jnp.sum(xlogy - y * x, axis=-1, keepdims=True)
                   + lse * jnp.sum(y, axis=-1, keepdims=True))              # (tile_n, 1)

        if need_mask:
            # Last batch tile may extend past N: zero out the garbage rows.
            row0 = pl.program_id(0) * tile_n
            rows = row0 + lax.broadcasted_iota(jnp.int32, (tile_n, 1), 0)
            row_sum = jnp.where(rows < n_rows, row_sum, 0.0)

        # One scalar per tile, broadcast into a lane-dense (8, 128) output block.
        tile_sum = jnp.sum(row_sum).reshape(1, 1)
        out_ref[...] = jnp.broadcast_to(tile_sum, out_ref.shape)

    return kernel


def one_hot_cross_entropy(x, y, *, tile_n=None):
    """x: (N, C) logits, y: (N, C) target probs (e.g. one-hot). Returns scalar f32."""
    assert x.shape == y.shape and x.ndim == 2
    N, C = x.shape
    C_lanes = _round_up(C, 128)  # physical lane footprint of one row in VMEM

    # Largest batch tile whose double-buffered input blocks + f32 temporaries fit
    # a conservative VMEM budget (also safe under v7x's 64 MiB physical VMEM).
    per_row_bytes = (2 * C_lanes * (x.dtype.itemsize + y.dtype.itemsize)  # 2x dbl-buffered x, y
                     + 4 * C_lanes * 4)                                   # f32 intermediates
    if tile_n is None:
        budget = 24 * 1024 * 1024
        tile_n = max(8, min(1024, (budget // per_row_bytes) // 8 * 8))
    tile_n = max(8, min(_round_up(tile_n, 8), _round_up(N, 8)))

    num_tiles = pl.cdiv(N, tile_n)
    need_mask = (num_tiles * tile_n != N)

    vmem_limit = int(min(64 << 20, max(32 << 20, tile_n * per_row_bytes + (8 << 20))))

    partials = pl.pallas_call(
        _make_kernel(N, tile_n, need_mask),
        out_shape=jax.ShapeDtypeStruct((num_tiles * 8, 128), jnp.float32),
        grid_spec=pltpu.PrefetchScalarGridSpec(
            num_scalar_prefetch=0,
            grid=(num_tiles,),
            in_specs=[
                pl.BlockSpec((tile_n, C), lambda i: (i, 0)),  # full-C block: no pad copy
                pl.BlockSpec((tile_n, C), lambda i: (i, 0)),
            ],
            out_specs=pl.BlockSpec((8, 128), lambda i: (i, 0)),
        ),
        compiler_params=pltpu.CompilerParams(
            dimension_semantics=("parallel",),  # batch tiles are independent
            vmem_limit_bytes=vmem_limit,
        ),
    )(x, y)

    # reduction='batchmean': sum over ALL elements / batch size (original N).
    tile_sums = partials.reshape(num_tiles, 8, 128)[:, 0, 0]
    return jnp.sum(tile_sums) / jnp.float32(N)


def _reference(x, y):
    log_q = jax.nn.log_softmax(x.astype(jnp.float32), axis=1)
    yf = y.astype(jnp.float32)
    xlogy = jnp.where(yf > 0, yf * jnp.log(jnp.where(yf > 0, yf, 1.0)), 0.0)
    return jnp.sum(xlogy - yf * log_q) / x.shape[0]


if __name__ == "__main__":
    key = jax.random.PRNGKey(0)
    kx, kl, ks = jax.random.split(key, 3)

    # 1) one-hot targets at small shapes (batch=8, classes=32)
    N, C = 8, 32
    x = jax.random.normal(kx, (N, C), dtype=jnp.float32)
    labels = jax.random.randint(kl, (N,), 0, C)
    y = jax.nn.one_hot(labels, C, dtype=jnp.float32)

    loss = one_hot_cross_entropy(x, y)
    jax.block_until_ready(loss)
    ref = _reference(x, y)
    assert jnp.allclose(loss, ref, rtol=1e-5, atol=1e-5), (loss, ref)

    # 2) soft (non-one-hot) targets with unaligned N and C (exercises the
    #    full-extent class block and the row-mask path in a single tile).
    N2, C2 = 10, 200
    x2 = jax.random.normal(kx, (N2, C2), dtype=jnp.float32)
    y2 = jax.nn.softmax(jax.random.normal(ks, (N2, C2), dtype=jnp.float32), axis=1)
    loss2 = one_hot_cross_entropy(x2, y2)
    jax.block_until_ready(loss2)
    ref2 = _reference(x2, y2)
    assert jnp.allclose(loss2, ref2, rtol=1e-5, atol=1e-5), (loss2, ref2)

    # 3) multi-tile grid with a partial last tile (explicit small tile_n).
    N3, C3 = 40, 96
    x3 = jax.random.normal(ks, (N3, C3), dtype=jnp.float32)
    labels3 = jax.random.randint(kl, (N3,), 0, C3)
    y3 = jax.nn.one_hot(labels3, C3, dtype=jnp.float32)
    loss3 = one_hot_cross_entropy(x3, y3, tile_n=16)
    jax.block_until_ready(loss3)
    ref3 = _reference(x3, y3)
    assert jnp.allclose(loss3, ref3, rtol=1e-5, atol=1e-5), (loss3, ref3)

    print("KERNEL_OK")
</pallas_src>

<mosaic_0001>
module attributes {stable_mosaic.version = 11 : i64} {
  func.func @kernel(%arg0: i32, %arg1: memref<8x32xf32, #tpu.memory_space<vmem>>, %arg2: memref<8x32xf32, #tpu.memory_space<vmem>>, %arg3: memref<8x128xf32, #tpu.memory_space<vmem>>) attributes {dimension_semantics = [#tpu.dimension_semantics<parallel>], iteration_bounds = array<i64: 1>, scalar_prefetch = 0 : i64, scratch_operands = 0 : i64, tpu.core_type = #tpu.core_type<tc>, window_params = [{transform_indices = @transform_0, window_bounds = array<i64: 8, 32>}, {transform_indices = @transform_1, window_bounds = array<i64: 8, 32>}, {transform_indices = @transform_2, window_bounds = array<i64: 8, 128>}]} {
    %c0 = arith.constant 0 : index
    %c0_0 = arith.constant 0 : index
    %0 = vector.load %arg1[%c0, %c0_0] : memref<8x32xf32, #tpu.memory_space<vmem>>, vector<8x32xf32>
    %c0_1 = arith.constant 0 : index
    %c0_2 = arith.constant 0 : index
    %1 = vector.load %arg2[%c0_1, %c0_2] : memref<8x32xf32, #tpu.memory_space<vmem>>, vector<8x32xf32>
    %cst = arith.constant dense<0xFF800000> : vector<8xf32>
    %2 = vector.multi_reduction <maximumf>, %0, %cst [1] : vector<8x32xf32> to vector<8xf32>
    %3 = vector.shape_cast %2 : vector<8xf32> to vector<8x1xf32>
    %4 = vector.broadcast %3 : vector<8x1xf32> to vector<8x32xf32>
    %5 = arith.subf %0, %4 : vector<8x32xf32>
    %6 = math.exp %5 : vector<8x32xf32>
    %cst_3 = arith.constant dense<0.000000e+00> : vector<8xf32>
    %7 = vector.multi_reduction <add>, %6, %cst_3 [1] : vector<8x32xf32> to vector<8xf32>
    %8 = vector.shape_cast %7 : vector<8xf32> to vector<8x1xf32>
    %9 = math.log %8 : vector<8x1xf32>
    %10 = arith.addf %9, %3 : vector<8x1xf32>
    %cst_4 = arith.constant 0.000000e+00 : f32
    %11 = vector.broadcast %cst_4 : f32 to vector<8x32xf32>
    %12 = arith.cmpf ogt, %1, %11 : vector<8x32xf32>
    %cst_5 = arith.constant 0.000000e+00 : f32
    %13 = vector.broadcast %cst_5 : f32 to vector<8x32xf32>
    %14 = arith.cmpf ogt, %1, %13 : vector<8x32xf32>
    %cst_6 = arith.constant 1.000000e+00 : f32
    %15 = vector.broadcast %cst_6 : f32 to vector<8x32xf32>
    %16 = arith.select %14, %1, %15 : vector<8x32xi1>, vector<8x32xf32>
    %17 = math.log %16 : vector<8x32xf32>
    %18 = arith.mulf %1, %17 : vector<8x32xf32>
    %cst_7 = arith.constant 0.000000e+00 : f32
    %19 = vector.broadcast %cst_7 : f32 to vector<8x32xf32>
    %20 = arith.select %12, %18, %19 : vector<8x32xi1>, vector<8x32xf32>
    %21 = arith.mulf %1, %0 : vector<8x32xf32>
    %22 = arith.subf %20, %21 : vector<8x32xf32>
    %cst_8 = arith.constant dense<0.000000e+00> : vector<8xf32>
    %23 = vector.multi_reduction <add>, %22, %cst_8 [1] : vector<8x32xf32> to vector<8xf32>
    %24 = vector.shape_cast %23 : vector<8xf32> to vector<8x1xf32>
    %cst_9 = arith.constant dense<0.000000e+00> : vector<8xf32>
    %25 = vector.multi_reduction <add>, %1, %cst_9 [1] : vector<8x32xf32> to vector<8xf32>
    %26 = vector.shape_cast %25 : vector<8xf32> to vector<8x1xf32>
    %27 = arith.mulf %10, %26 : vector<8x1xf32>
    %28 = arith.addf %24, %27 : vector<8x1xf32>
    %29 = vector.shape_cast %28 : vector<8x1xf32> to vector<1x8x1xf32>
    %cst_10 = arith.constant dense<0.000000e+00> : vector<1xf32>
    %30 = vector.multi_reduction <add>, %29, %cst_10 [1, 2] : vector<1x8x1xf32> to vector<1xf32>
    %31 = vector.shape_cast %30 : vector<1xf32> to vector<1x1x1xf32>
    %32 = vector.extract %31[0, 0, 0] : f32 from vector<1x1x1xf32>
    %33 = vector.broadcast %32 : f32 to vector<1x1xf32>
    %34 = vector.shape_cast %33 : vector<1x1xf32> to vector<1x1xf32>
    %35 = vector.broadcast %34 : vector<1x1xf32> to vector<8x128xf32>
    %c0_11 = arith.constant 0 : index
    %c0_12 = arith.constant 0 : index
    %36 = vector.load %arg3[%c0_11, %c0_12] : memref<8x128xf32, #tpu.memory_space<vmem>>, vector<8x128xf32>
    tpu.vector_store %arg3[%c0_11, %c0_12], %35 {strides = array<i32>} : memref<8x128xf32, #tpu.memory_space<vmem>>, vector<8x128xf32>,
    return
  }
  func.func @transform_0(%arg0: i32) -> (i32, i32) {
    %c0_i32 = arith.constant 0 : i32
    %c0_i32_0 = arith.constant 0 : i32
    return %arg0, %c0_i32 : i32, i32
  }
  func.func @transform_1(%arg0: i32) -> (i32, i32) {
    %c0_i32 = arith.constant 0 : i32
    %c0_i32_0 = arith.constant 0 : i32
    return %arg0, %c0_i32 : i32, i32
  }
  func.func @transform_2(%arg0: i32) -> (i32, i32) {
    %c0_i32 = arith.constant 0 : i32
    %c0_i32_0 = arith.constant 0 : i32
    return %arg0, %c0_i32 : i32, i32
  }
}

</mosaic_0001>

<bundles_post_ra>
// kernel: tpu_custom_call.1
= control target key start
LH: loop header
LB: loop body
LE: loop exit
PB: predicated region body
PF: predicated region fallthrough
CT: control target
= control target key end

     0   :  { %7 = vsyncpa [#allocation3], 0  ;;  %s237_s0 = inlined_call_operand.hbm [shape: f32[8,32], index: 0, kind: input, shape index: {}]   ;;  %s238_s1 = inlined_call_operand.hbm [shape: f32[8,32], index: 1, kind: input, shape index: {}]   ;;  %s239_s2 = inlined_call_operand.hbm [shape: f32[8,128], index: 2, kind: output, shape index: {}]  }
   0x1   :  { %8 = vsyncpa [#allocation6], 0 }
   0x2   :  { %9 = vsyncpa [#allocation4], 0  ;;  %s179_s9 = smov [#allocation2]   ;;  %s180_s11 = smov [#allocation5]  }
   0x3   :  { %s16_s10 = sshll.u32 %s179_s9, 4  ;;  %s26_s12 = sshll.u32 %s180_s11, 4  ;;  %s17_s10 = int_to_ptr.vmem [resolvable:$true] %s16_s10  ;;  %s27_s12 = int_to_ptr.vmem [resolvable:$true] %s26_s12 }
   0x4   :  { %s107_s15 = scalar_lea.hbm %s237_s0, 128 }
   0x5   :  { %p108_p0 = scmp.ne.s32.totalorder %s237_s0, %s107_s15  ;;  %p111_p1 = scmp.lt.u32.totalorder %s107_s15, %s237_s0 }
   0x7   :  { %p113_p2 = pnand %p111_p1, %p108_p0 }
   0x9   :  { %116 = shalt.err (!%p113_p2)
}
   0xa   :  { %s117_s20 = scalar_lea.vmem %s17_s10, 128  ;;  %p122_p4 = scmp.lt.s32.totalorder %s17_s10, %s17_s10 }
   0xb   :  { %p118_p3 = scmp.ne.s32.totalorder %s17_s10, %s117_s20  ;;  %p123_p5 = scmp.lt.s32.totalorder %s117_s20, %s117_s20 }
   0xd   :  { %p124_p6 = por %p123_p5, %p122_p4 }
   0xf   :  { %p125_p7 = pnand %p124_p6, %p118_p3 }
  0x11   :  { %128 = shalt.err (!%p125_p7)
}
  0x12   :  { %19 = dma.hbm_to_vmem [thread:$0]  %s237_s0, 128, %s17_s10, [#allocation3]  }
  0x13   :  { %s129_s25 = scalar_lea.hbm %s238_s1, 128 }
  0x14   :  { %p130_p8 = scmp.ne.s32.totalorder %s238_s1, %s129_s25  ;;  %p133_p9 = scmp.lt.u32.totalorder %s129_s25, %s238_s1 }
  0x16   :  { %p135_p10 = pnand %p133_p9, %p130_p8 }
  0x18   :  { %138 = shalt.err (!%p135_p10)
}
  0x19   :  { %s139_s30 = scalar_lea.vmem %s27_s12, 128  ;;  %p144_p12 = scmp.lt.s32.totalorder %s27_s12, %s27_s12 }
  0x1a   :  { %p140_p11 = scmp.ne.s32.totalorder %s27_s12, %s139_s30  ;;  %p145_p13 = scmp.lt.s32.totalorder %s139_s30, %s139_s30 }
  0x1c   :  { %p146_p0 = por %p145_p13, %p144_p12 }
  0x1e   :  { %p147_p1 = pnand %p146_p0, %p140_p11 }
  0x20   :  { %150 = shalt.err (!%p147_p1)
}
  0x21   :  { %29 = dma.hbm_to_vmem [thread:$0]  %s238_s1, 128, %s27_s12, [#allocation6]  }
  0x22   :  { %173 = dma.done.wait [#allocation3], 128  }
  0x23   :  { %174 = vsyncadd [#allocation3], 4294967168 }
  0x24   :  { %175 = dma.done.wait [#allocation6], 128  }
  0x25   :  { %176 = vsyncadd [#allocation6], 4294967168  ;;  %vm38_vm0 = vcmask 261120   ;;  %v36_v0 = vld [vmem:[#allocation2] sm:$0xff]  ;;  %v37_v2 = vld [vmem:[#allocation5] sm:$0xff]  ;;  %vm67_vm2 = vcmask 7168  }
  0x26   :  { %v39_v1 = vsel %vm38_vm0, %v36_v0, -inf  ;;  %vm51_vm1 = vcmp.gt.f32.partialorder %v37_v2, 0.0  ;;  %v62_v4 = vsel %vm38_vm0, %v37_v2, 0.0  ;;  %v57_v7 = vmul.f32 %v37_v2, %v36_v0  ;;  %s181_s1 = smov [#allocation7]  }
  0x27   :  { %40 = vmax.xlane.f32.xlu0 %v39_v1  ;;  %v52_v3 = vsel %vm51_vm1, %v37_v2, 1.0  ;;  %63 = vadd.xlane.f32.xlu1 %v62_v4  ;;  %s86_s4 = sshll.u32 %s181_s1, 4  ;;  %s87_s4 = int_to_ptr.vmem [resolvable:$true] %s86_s4 }
  0x28   :  { %101 = vlog2.f32 %v52_v3  ;;  %s151_s6 = scalar_lea.vmem %s87_s4, 128  ;;  %p156_p3 = scmp.lt.s32.totalorder %s87_s4, %s87_s4 }
  0x29   :  { %p152_p2 = scmp.ne.s32.totalorder %s87_s4, %s151_s6  ;;  %p157_p4 = scmp.lt.s32.totalorder %s151_s6, %s151_s6 }
  0x2b   :  { %p158_p5 = por %p157_p4, %p156_p3 }
  0x2d   :  { %p159_p6 = pnand %p158_p5, %p152_p2 }
  0x32   :  { %v102_v5 = vpop.eup %101 }
  0x33   :  { %v54_v6 = vmul.f32 0.6931472, %v102_v5 }
  0x35   :  { %v55_v8 = vmul.f32 %v54_v6, %v37_v2 }
  0x37   :  { %v56_v9 = vsel %vm51_vm1, %v55_v8, 0.0 }
  0x38   :  { %v58_v10 = vsub.f32 %v56_v9, %v57_v7 }
  0x3a   :  { %v59_v11 = vsel %vm38_vm0, %v58_v10, 0.0 }
  0x3b   :  { %60 = vadd.xlane.f32.xlu1 %v59_v11 }
  0xb4   :  { %v41_v12 = vpop.xlane.xlu0 %40  ;;  %v64_v18 = vpop.xlane.xlu1 %63 }
  0xb5   :  { %v42_v13 = vsub.f32 %v36_v0, %v41_v12 }
  0xb7   :  { %v43_v14 = vmul.f32 1.442695, %v42_v13 }
  0xb9   :  { %103 = vpow2.f32 %v43_v14 }
  0xc3   :  { %v104_v15 = vpop.eup %103 }
  0xc4   :  { %v45_v16 = vsel %vm38_vm0, %v104_v15, 0.0 }
  0xc5   :  { %46 = vadd.xlane.f32.xlu0 %v45_v16 }
  0xc8   :  { %v61_v22 = vpop.xlane.xlu1 %60 }
 0x152   :  { %v47_v17 = vpop.xlane.xlu0 %46 }
 0x153   :  { %105 = vlog2.f32 %v47_v17 }
 0x15d   :  { %v106_v19 = vpop.eup %105 }
 0x15e   :  { %v49_v20 = vmul.f32 0.6931472, %v106_v19 }
 0x160   :  { %v50_v21 = vadd.f32 %v49_v20, %v41_v12 }
 0x162   :  { %v65_v23 = vmul.f32 %v64_v18, %v50_v21 }
 0x164   :  { %v66_v24 = vadd.f32 %v65_v23, %v61_v22 }
 0x166   :  { %v68_v25 = vsel %vm67_vm2, %v66_v24, 0.0 }
 0x167   :  { %69 = vadd.xlane.f32.xlu0 %v68_v25 }
 0x1f4   :  { %v70_v26 = vpop.xlane.xlu0 %69 }
 0x1f5   :  { %v71_v27 = vrot.slane %v70_v26, 4 }
 0x1f7   :  { %v72_v28 = vadd.f32 %v71_v27, %v70_v26 }
 0x1f9   :  { %v73_v29 = vrot.slane %v72_v28, 2 }
 0x1fb   :  { %v74_v30 = vadd.f32 %v73_v29, %v72_v28 }
 0x1fd   :  { %v75_v31 = vrot.slane %v74_v30, 1 }
 0x1ff   :  { %v76_v32 = vadd.f32 %v75_v31, %v74_v30 }
 0x201   :  { %96 = vpush %v76_v32 }
 0x232   :  { %s97_s5 = spop %96 }
 0x233   :  { %v78_v33 = vstv %s97_s5 }
 0x234   :  { %79 = vst [vmem:[#allocation7] sm:$0xff] %v78_v33 }
 0x235   :  { %162 = shalt.err (!%p159_p6)
}
 0x236   :  { %s163_s9 = scalar_lea.hbm %s239_s2, 128 }
 0x237   :  { %p164_p7 = scmp.ne.s32.totalorder %s239_s2, %s163_s9  ;;  %p167_p8 = scmp.lt.u32.totalorder %s163_s9, %s239_s2 }
 0x239   :  { %p169_p9 = pnand %p167_p8, %p164_p7 }
 0x23b   :  { %172 = shalt.err (!%p169_p9)
}
 0x23c   :  { %89 = dma.vmem_to_hbm [thread:$0]  %s87_s4, 128, %s239_s2, [#allocation4]  }
 0x23d   :  { %177 = dma.done.wait [#allocation4], 128  }
 0x23e   :  { %178 = vsyncadd [#allocation4], 4294967168 }
 0x23f   :  { %93 = vsyncpa [#allocation3], 1 }
 0x240   :  { %94 = vsyncpa [#allocation6], 1 }
 0x241   :  { %95 = vsyncpa [#allocation4], 1 }

</bundles_post_ra>
